<compile_context>
chip_gen: v6e
topology: v6e:2x2x1
jax: 0.10.0
libtpu: 0.0.40
codegen_flags: <defaults>
</compile_context>

<pallas_src>
import jax
import jax.numpy as jnp
from jax.experimental import pallas as pl
from jax.experimental.pallas import tpu as pltpu

# Deterministic "module parameters" (scalar weights from __init__).
MASK_L2_WEIGHT = 7e-05
CHANNEL_WEIGHT = 0.004
SPATIAL_WEIGHT = 0.004
NONLOCAL_WEIGHT = 7e-05
LOSS_WEIGHT = 1.0


# --------------------------------------------------------------------------- #
# Kernel
# --------------------------------------------------------------------------- #
def _fbrd_kernel(t_sm_ref, s_sm_ref, t_sp_ref, s_sp_ref,
                 t_f_ref, s_f_ref, t_rl_ref, s_rl_ref,
                 ssq1_ref, chsum_ref, ssq3_ref, ssq4_ref,
                 acc1_ref, chacc_ref, acc3_ref, acc4_ref):
    """Grid = (p, h): p indexes (batch x optional HW-half), h the HW tiles."""
    f32 = jnp.float32
    h = pl.program_id(1)

    @pl.when(h == 0)
    def _init():
        acc1_ref[...] = jnp.zeros_like(acc1_ref)
        chacc_ref[...] = jnp.zeros_like(chacc_ref)
        acc3_ref[...] = jnp.zeros_like(acc3_ref)
        acc4_ref[...] = jnp.zeros_like(acc4_ref)

    # ---- term1: sum((t_feat - s_feat)^2 * spatial_sum_mask) -----------------
    t_f = t_f_ref[...].astype(f32)                       # (1, C, T), cast on load
    s_f = s_f_ref[...].astype(f32)
    d = t_f - s_f
    # Reduce over C first (sublane reduce), then apply the (1, 1, T) mask
    # (avoids broadcasting the mask across C).
    d2_over_c = jnp.sum(d * d, axis=1, keepdims=True)    # (1, 1, T)
    mask = (t_sm_ref[...].astype(f32) + s_sm_ref[...].astype(f32)) * 0.5
    acc1_ref[...] += jnp.sum(d2_over_c * mask, keepdims=True)

    # ---- term2 (fused): per-channel row sums of t_feat over HW --------------
    chacc_ref[...] += jnp.sum(t_f, axis=-1, keepdims=True)      # (1, C, 1)

    # ---- term3: sum((t_spatial_pool - s_spatial_pool)^2), streamed ----------
    d_sp = t_sp_ref[...].astype(f32) - s_sp_ref[...].astype(f32)
    acc3_ref[...] += jnp.sum(d_sp * d_sp, keepdims=True)

    # ---- term4: sum((t_relation - s_relation)^2) -----------------------------
    d_r = t_rl_ref[...].astype(f32) - s_rl_ref[...].astype(f32)
    acc4_ref[...] += jnp.sum(d_r * d_r, keepdims=True)

    # Write outputs once per sweep (outputs are VMEM-resident across h).
    @pl.when(h == pl.num_programs(1) - 1)
    def _finalize():
        ssq1_ref[...] = acc1_ref[...]
        chsum_ref[...] = chacc_ref[...]
        ssq3_ref[...] = acc3_ref[...]
        ssq4_ref[...] = acc4_ref[...]


# --------------------------------------------------------------------------- #
# Tiling / VMEM sizing helpers (generation-aware)
# --------------------------------------------------------------------------- #
def _round_up(x, m):
    return ((x + m - 1) // m) * m


def _vmem_capacity_bytes():
    try:
        info = pltpu.get_tpu_info()
        cap = getattr(info, "vmem_capacity_bytes", None)
        if cap:
            return int(cap)
    except Exception:
        pass
    return 64 << 20  # conservative fallback (v7x per-TensorCore VMEM)


def _choose_tiling(hw, c, itemsize):
    """Returns (TILE, HW_pad). TILE is a multiple of 128 dividing HW_pad."""
    cap = _vmem_capacity_bytes()
    # Budget for the 4 streamed (1, C, TILE) inputs, double-buffered:
    # generous on 128 MiB parts (v5e/v6e), tighter on 64 MiB parts (v7x).
    budget = (32 << 20) if cap >= (100 << 20) else (20 << 20)
    c_pad = max(8, _round_up(c, 8))
    max_tile = budget // (4 * 2 * c_pad * max(1, itemsize))
    max_tile = max(128, (max_tile // 128) * 128)
    max_tile = min(max_tile, 8192)

    if hw % 128 == 0:
        # No padding needed: largest multiple-of-128 divisor of HW <= max_tile.
        tile = 128
        t = 128
        while t <= min(hw, max_tile):
            if hw % t == 0:
                tile = t
            t += 128
        return tile, hw
    # HW not a multiple of 128: zero-pad up to a multiple of the chosen tile.
    tile = min(max_tile, max(128, _round_up(min(hw, 1024), 128)))
    return tile, _round_up(hw, tile)


def _vmem_limit_bytes(c, tile, itemsize):
    cap = _vmem_capacity_bytes()
    c_pad = max(8, _round_up(c, 8))
    lane = _round_up(tile, 128)
    big = 4 * 2 * c_pad * lane * itemsize        # 4 streamed (1,C,TILE), 2-deep
    small = 4 * 2 * 8 * lane * itemsize          # 4 streamed (1,1,TILE), sublane-padded
    outs = 2 * (3 * 8 * 128 + c_pad * 128) * 4   # tiny padded output blocks
    scratch = (3 * 8 * 128 + c_pad * 128) * 4    # f32 accumulators
    total = big + small + outs + scratch
    limit = 2 * total + (4 << 20)                # headroom for compiler internals
    hard_cap = max(cap - (8 << 20), 16 << 20)    # never set limit == physical VMEM
    return int(min(max(limit, 16 << 20), hard_cap))


# --------------------------------------------------------------------------- #
# Wrapper
# --------------------------------------------------------------------------- #
def fbrd_loss(s_input, t_input, *, tile=None):
    (s_spatial_mask, s_channel_mask, s_channel_pool_adapt, s_spatial_pool_adapt,
     s_relation_adapt, s_feat_adapt) = s_input
    (t_spatial_mask, t_channel_mask, t_spatial_pool, t_relation, t_feat) = t_input
    del s_channel_mask, t_channel_mask  # channel_sum_mask unused in the forward

    N, C, H, W = t_feat.shape
    HW = H * W
    itemsize = max(jnp.dtype(a.dtype).itemsize
                   for a in (t_feat, s_feat_adapt, t_relation, s_relation_adapt))

    if tile is None:
        TILE, HW_pad = _choose_tiling(HW, C, itemsize)
    else:
        TILE = int(tile)
        HW_pad = _round_up(HW, TILE)
    num_hw_tiles = HW_pad // TILE

    # Reshape (+ zero-pad if HW is not a multiple of 128). Zero padding is
    # numerically inert for every term; no dtype casts here (done in-kernel).
    def prep(x, ch):
        x = x.reshape(N, ch, HW)
        if HW_pad != HW:
            x = jnp.pad(x, ((0, 0), (0, 0), (0, HW_pad - HW)))
        return x

    t_sm = prep(t_spatial_mask, 1)
    s_sm = prep(s_spatial_mask, 1)
    t_sp = prep(t_spatial_pool, 1)
    s_sp = prep(s_spatial_pool_adapt, 1)
    t_f = prep(t_feat, C)
    s_f = prep(s_feat_adapt, C)
    t_rl = prep(t_relation, C)
    s_rl = prep(s_relation_adapt, C)

    # Split the HW sweep into two "parallel" halves when the batch axis alone
    # can't occupy both v7x TensorCores (N odd, tile count even).
    S = 2 if (N % 2 == 1 and num_hw_tiles % 2 == 0 and num_hw_tiles >= 2) else 1
    NH = num_hw_tiles // S
    P = N * S

    if S == 1:
        stream_map = lambda p, h: (p, 0, h)
    else:
        stream_map = lambda p, h: (p // S, 0, (p % S) * NH + h)
    out_map = lambda p, h: (p, 0, 0)

    small_spec = pl.BlockSpec((1, 1, TILE), stream_map)
    big_spec = pl.BlockSpec((1, C, TILE), stream_map)

    out_shape = (
        jax.ShapeDtypeStruct((P, 1, 1), jnp.float32),   # term1 partial SSQ
        jax.ShapeDtypeStruct((P, C, 1), jnp.float32),   # per-channel sums of t_feat
        jax.ShapeDtypeStruct((P, 1, 1), jnp.float32),   # term3 partial SSQ
        jax.ShapeDtypeStruct((P, 1, 1), jnp.float32),   # term4 partial SSQ
    )
    out_specs = (
        pl.BlockSpec((1, 1, 1), out_map),
        pl.BlockSpec((1, C, 1), out_map),
        pl.BlockSpec((1, 1, 1), out_map),
        pl.BlockSpec((1, 1, 1), out_map),
    )

    ssq1, chsum, ssq3, ssq4 = pl.pallas_call(
        _fbrd_kernel,
        out_shape=out_shape,
        grid_spec=pltpu.PrefetchScalarGridSpec(
            num_scalar_prefetch=0,
            grid=(P, NH),
            in_specs=[small_spec, small_spec,   # t_sm, s_sm  (streamed)
                      small_spec, small_spec,   # t_sp, s_sp  (streamed)
                      big_spec, big_spec,       # t_f, s_f    (streamed)
                      big_spec, big_spec],      # t_rl, s_rl  (streamed)
            out_specs=out_specs,
            scratch_shapes=[pltpu.VMEM((1, 1, 1), jnp.float32),
                            pltpu.VMEM((1, C, 1), jnp.float32),
                            pltpu.VMEM((1, 1, 1), jnp.float32),
                            pltpu.VMEM((1, 1, 1), jnp.float32)]),
        compiler_params=pltpu.CompilerParams(
            dimension_semantics=("parallel", "arbitrary"),
            vmem_limit_bytes=_vmem_limit_bytes(C, TILE, itemsize)),
    )(t_sm, s_sm, t_sp, s_sp, t_f, s_f, t_rl, s_rl)

    # Tiny scalar epilogue in XLA: cross-partial adds, channel mean, sqrt, weights.
    f32 = jnp.float32
    t_cpool = chsum.reshape(N, S, C).sum(axis=1) / f32(HW)          # true HW
    term1 = jnp.sqrt(jnp.sum(ssq1)) * MASK_L2_WEIGHT
    term2 = jnp.sqrt(jnp.sum(
        (t_cpool - s_channel_pool_adapt.astype(f32)) ** 2)) * CHANNEL_WEIGHT
    term3 = jnp.sqrt(jnp.sum(ssq3)) * SPATIAL_WEIGHT
    term4 = jnp.sqrt(jnp.sum(ssq4)) * NONLOCAL_WEIGHT
    return LOSS_WEIGHT * (term1 + term2 + term3 + term4)


# --------------------------------------------------------------------------- #
# Pure-JAX reference (replica of the PyTorch forward) + tests
# --------------------------------------------------------------------------- #
def _reference(s_input, t_input):
    (s_sm, _s_cm, s_cp, s_sp, s_rel, s_feat) = s_input
    (t_sm, _t_cm, t_sp, t_rel, t_feat) = t_input
    spatial_sum_mask = (t_sm + s_sm) / 2.0
    l1 = jnp.sqrt(jnp.sum(((t_feat - s_feat) ** 2) * spatial_sum_mask)) * MASK_L2_WEIGHT
    l2 = jnp.sqrt(jnp.sum((jnp.mean(t_feat, axis=(2, 3)) - s_cp) ** 2)) * CHANNEL_WEIGHT
    l3 = jnp.sqrt(jnp.sum((t_sp - s_sp) ** 2)) * SPATIAL_WEIGHT
    l4 = jnp.sqrt(jnp.sum((t_rel - s_rel) ** 2)) * NONLOCAL_WEIGHT
    return LOSS_WEIGHT * (l1 + l2 + l3 + l4)


def _make_inputs(key, N, C, H, W, dtype=jnp.float32):
    ks = jax.random.split(key, 11)
    HW = H * W
    s_spatial_mask = (jax.nn.softmax(jax.random.normal(ks[0], (N, 1, HW)), axis=-1)
                      .reshape(N, 1, H, W) * HW).astype(dtype)
    s_channel_mask = (jax.nn.softmax(jax.random.normal(ks[1], (N, C)), axis=-1)
                      .reshape(N, C, 1, 1) * C).astype(dtype)
    s_channel_pool_adapt = jax.random.normal(ks[2], (N, C), dtype)
    s_spatial_pool_adapt = jax.random.normal(ks[3], (N, 1, H, W), dtype)
    s_relation_adapt = jax.random.normal(ks[4], (N, C, H, W), dtype)
    s_feat_adapt = jax.random.normal(ks[5], (N, C, H, W), dtype)
    t_spatial_mask = (jax.nn.softmax(jax.random.normal(ks[6], (N, 1, HW)), axis=-1)
                      .reshape(N, 1, H, W) * HW).astype(dtype)
    t_channel_mask = (jax.nn.softmax(jax.random.normal(ks[7], (N, C)), axis=-1)
                      .reshape(N, C, 1, 1) * C).astype(dtype)
    t_spatial_pool = jax.random.normal(ks[8], (N, 1, H, W), dtype)
    t_relation = jax.random.normal(ks[9], (N, C, H, W), dtype)
    t_feat = jax.random.normal(ks[10], (N, C, H, W), dtype)
    s_input = (s_spatial_mask, s_channel_mask, s_channel_pool_adapt,
               s_spatial_pool_adapt, s_relation_adapt, s_feat_adapt)
    t_input = (t_spatial_mask, t_channel_mask, t_spatial_pool, t_relation, t_feat)
    return s_input, t_input


if __name__ == "__main__":
    key = jax.random.PRNGKey(0)
    cases = [
        # (N, C, H, W, tile_override)
        (2, 4, 16, 16, None),   # default auto-tiling, batch-parallel grid
        (1, 4, 16, 16, 128),    # N == 1: HW sweep split into 2 "parallel" halves
        (2, 6, 14, 14, None),   # HW not a multiple of 128: zero-pad path
    ]
    for idx, (N, C, H, W, tile) in enumerate(cases):
        s_in, t_in = _make_inputs(jax.random.fold_in(key, idx), N, C, H, W)
        out = jax.block_until_ready(fbrd_loss(s_in, t_in, tile=tile))
        ref = jax.block_until_ready(_reference(s_in, t_in))
        assert jnp.allclose(out, ref, rtol=3e-5, atol=1e-6), (idx, out, ref)
    print("KERNEL_OK")
</pallas_src>

<mosaic_0001>
module attributes {stable_mosaic.version = 11 : i64} {
  func.func @_fbrd_kernel(%arg0: i32, %arg1: i32, %arg2: memref<1x1x256xf32, #tpu.memory_space<vmem>>, %arg3: memref<1x1x256xf32, #tpu.memory_space<vmem>>, %arg4: memref<1x1x256xf32, #tpu.memory_space<vmem>>, %arg5: memref<1x1x256xf32, #tpu.memory_space<vmem>>, %arg6: memref<1x4x256xf32, #tpu.memory_space<vmem>>, %arg7: memref<1x4x256xf32, #tpu.memory_space<vmem>>, %arg8: memref<1x4x256xf32, #tpu.memory_space<vmem>>, %arg9: memref<1x4x256xf32, #tpu.memory_space<vmem>>, %arg10: memref<1x1x1xf32, #tpu.memory_space<vmem>>, %arg11: memref<1x4x1xf32, #tpu.memory_space<vmem>>, %arg12: memref<1x1x1xf32, #tpu.memory_space<vmem>>, %arg13: memref<1x1x1xf32, #tpu.memory_space<vmem>>, %arg14: memref<1x1x1xf32, #tpu.memory_space<vmem>>, %arg15: memref<1x4x1xf32, #tpu.memory_space<vmem>>, %arg16: memref<1x1x1xf32, #tpu.memory_space<vmem>>, %arg17: memref<1x1x1xf32, #tpu.memory_space<vmem>>) attributes {dimension_semantics = [#tpu.dimension_semantics<parallel>, #tpu.dimension_semantics<arbitrary>], iteration_bounds = array<i64: 2, 1>, scalar_prefetch = 0 : i64, scratch_operands = 4 : i64, tpu.core_type = #tpu.core_type<tc>, window_params = [{transform_indices = @transform_0, window_bounds = array<i64: 1, 1, 256>}, {transform_indices = @transform_1, window_bounds = array<i64: 1, 1, 256>}, {transform_indices = @transform_2, window_bounds = array<i64: 1, 1, 256>}, {transform_indices = @transform_3, window_bounds = array<i64: 1, 1, 256>}, {transform_indices = @transform_4, window_bounds = array<i64: 1, 4, 256>}, {transform_indices = @transform_5, window_bounds = array<i64: 1, 4, 256>}, {transform_indices = @transform_6, window_bounds = array<i64: 1, 4, 256>}, {transform_indices = @transform_7, window_bounds = array<i64: 1, 4, 256>}, {transform_indices = @transform_8, window_bounds = array<i64: 1, 1, 1>}, {transform_indices = @transform_9, window_bounds = array<i64: 1, 4, 1>}, {transform_indices = @transform_10, window_bounds = array<i64: 1, 1, 1>}, {transform_indices = @transform_11, window_bounds = array<i64: 1, 1, 1>}]} {
    %c0_i32 = arith.constant 0 : i32
    %0 = arith.cmpi eq, %arg1, %c0_i32 : i32
    %1 = arith.extui %0 : i1 to i32
    %c0_i32_0 = arith.constant 0 : i32
    %2 = arith.cmpi ne, %1, %c0_i32_0 : i32
    scf.if %2 {
      %cst_55 = arith.constant 0.000000e+00 : f32
      %55 = vector.broadcast %cst_55 : f32 to vector<1x1x1xf32>
      %c0_56 = arith.constant 0 : index
      %c0_57 = arith.constant 0 : index
      %c0_58 = arith.constant 0 : index
      %56 = vector.load %arg14[%c0_56, %c0_57, %c0_58] : memref<1x1x1xf32, #tpu.memory_space<vmem>>, vector<1x1x1xf32>
      tpu.vector_store %arg14[%c0_56, %c0_57, %c0_58], %55 {strides = array<i32>} : memref<1x1x1xf32, #tpu.memory_space<vmem>>, vector<1x1x1xf32>,
      %cst_59 = arith.constant 0.000000e+00 : f32
      %57 = vector.broadcast %cst_59 : f32 to vector<1x4x1xf32>
      %c0_60 = arith.constant 0 : index
      %c0_61 = arith.constant 0 : index
      %c0_62 = arith.constant 0 : index
      %58 = vector.load %arg15[%c0_60, %c0_61, %c0_62] : memref<1x4x1xf32, #tpu.memory_space<vmem>>, vector<1x4x1xf32>
      tpu.vector_store %arg15[%c0_60, %c0_61, %c0_62], %57 {strides = array<i32>} : memref<1x4x1xf32, #tpu.memory_space<vmem>>, vector<1x4x1xf32>,
      %cst_63 = arith.constant 0.000000e+00 : f32
      %59 = vector.broadcast %cst_63 : f32 to vector<1x1x1xf32>
      %c0_64 = arith.constant 0 : index
      %c0_65 = arith.constant 0 : index
      %c0_66 = arith.constant 0 : index
      %60 = vector.load %arg16[%c0_64, %c0_65, %c0_66] : memref<1x1x1xf32, #tpu.memory_space<vmem>>, vector<1x1x1xf32>
      tpu.vector_store %arg16[%c0_64, %c0_65, %c0_66], %59 {strides = array<i32>} : memref<1x1x1xf32, #tpu.memory_space<vmem>>, vector<1x1x1xf32>,
      %cst_67 = arith.constant 0.000000e+00 : f32
      %61 = vector.broadcast %cst_67 : f32 to vector<1x1x1xf32>
      %c0_68 = arith.constant 0 : index
      %c0_69 = arith.constant 0 : index
      %c0_70 = arith.constant 0 : index
      %62 = vector.load %arg17[%c0_68, %c0_69, %c0_70] : memref<1x1x1xf32, #tpu.memory_space<vmem>>, vector<1x1x1xf32>
      tpu.vector_store %arg17[%c0_68, %c0_69, %c0_70], %61 {strides = array<i32>} : memref<1x1x1xf32, #tpu.memory_space<vmem>>, vector<1x1x1xf32>,
    } else {
    }
    %c0 = arith.constant 0 : index
    %c0_1 = arith.constant 0 : index
    %c0_2 = arith.constant 0 : index
    %3 = vector.load %arg6[%c0, %c0_1, %c0_2] : memref<1x4x256xf32, #tpu.memory_space<vmem>>, vector<1x4x256xf32>
    %c0_3 = arith.constant 0 : index
    %c0_4 = arith.constant 0 : index
    %c0_5 = arith.constant 0 : index
    %4 = vector.load %arg7[%c0_3, %c0_4, %c0_5] : memref<1x4x256xf32, #tpu.memory_space<vmem>>, vector<1x4x256xf32>
    %5 = arith.subf %3, %4 : vector<1x4x256xf32>
    %6 = arith.mulf %5, %5 : vector<1x4x256xf32>
    %cst = arith.constant dense<0.000000e+00> : vector<1x256xf32>
    %7 = vector.multi_reduction <add>, %6, %cst [1] : vector<1x4x256xf32> to vector<1x256xf32>
    %8 = vector.shape_cast %7 : vector<1x256xf32> to vector<1x1x256xf32>
    %c0_6 = arith.constant 0 : index
    %c0_7 = arith.constant 0 : index
    %c0_8 = arith.constant 0 : index
    %9 = vector.load %arg2[%c0_6, %c0_7, %c0_8] : memref<1x1x256xf32, #tpu.memory_space<vmem>>, vector<1x1x256xf32>
    %c0_9 = arith.constant 0 : index
    %c0_10 = arith.constant 0 : index
    %c0_11 = arith.constant 0 : index
    %10 = vector.load %arg3[%c0_9, %c0_10, %c0_11] : memref<1x1x256xf32, #tpu.memory_space<vmem>>, vector<1x1x256xf32>
    %11 = arith.addf %9, %10 : vector<1x1x256xf32>
    %cst_12 = arith.constant 5.000000e-01 : f32
    %12 = vector.broadcast %cst_12 : f32 to vector<1x1x256xf32>
    %13 = arith.mulf %11, %12 : vector<1x1x256xf32>
    %c0_13 = arith.constant 0 : index
    %c0_14 = arith.constant 0 : index
    %c0_15 = arith.constant 0 : index
    %14 = vector.load %arg14[%c0_13, %c0_14, %c0_15] : memref<1x1x1xf32, #tpu.memory_space<vmem>>, vector<1x1x1xf32>
    %15 = arith.mulf %8, %13 : vector<1x1x256xf32>
    %16 = vector.shape_cast %15 : vector<1x1x256xf32> to vector<1x1x1x256xf32>
    %cst_16 = arith.constant dense<0.000000e+00> : vector<1xf32>
    %17 = vector.multi_reduction <add>, %16, %cst_16 [1, 2, 3] : vector<1x1x1x256xf32> to vector<1xf32>
    %18 = vector.shape_cast %17 : vector<1xf32> to vector<1x1x1x1xf32>
    %19 = vector.extract %18[0, 0, 0, 0] : f32 from vector<1x1x1x1xf32>
    %20 = vector.broadcast %19 : f32 to vector<1x1x1xf32>
    %21 = arith.addf %14, %20 : vector<1x1x1xf32>
    %c0_17 = arith.constant 0 : index
    %c0_18 = arith.constant 0 : index
    %c0_19 = arith.constant 0 : index
    %22 = vector.load %arg14[%c0_17, %c0_18, %c0_19] : memref<1x1x1xf32, #tpu.memory_space<vmem>>, vector<1x1x1xf32>
    tpu.vector_store %arg14[%c0_17, %c0_18, %c0_19], %21 {strides = array<i32>} : memref<1x1x1xf32, #tpu.memory_space<vmem>>, vector<1x1x1xf32>,
    %c0_20 = arith.constant 0 : index
    %c0_21 = arith.constant 0 : index
    %c0_22 = arith.constant 0 : index
    %23 = vector.load %arg15[%c0_20, %c0_21, %c0_22] : memref<1x4x1xf32, #tpu.memory_space<vmem>>, vector<1x4x1xf32>
    %cst_23 = arith.constant dense<0.000000e+00> : vector<1x4xf32>
    %24 = vector.multi_reduction <add>, %3, %cst_23 [2] : vector<1x4x256xf32> to vector<1x4xf32>
    %25 = vector.shape_cast %24 : vector<1x4xf32> to vector<1x4x1xf32>
    %26 = arith.addf %23, %25 : vector<1x4x1xf32>
    %c0_24 = arith.constant 0 : index
    %c0_25 = arith.constant 0 : index
    %c0_26 = arith.constant 0 : index
    %27 = vector.load %arg15[%c0_24, %c0_25, %c0_26] : memref<1x4x1xf32, #tpu.memory_space<vmem>>, vector<1x4x1xf32>
    tpu.vector_store %arg15[%c0_24, %c0_25, %c0_26], %26 {strides = array<i32>} : memref<1x4x1xf32, #tpu.memory_space<vmem>>, vector<1x4x1xf32>,
    %c0_27 = arith.constant 0 : index
    %c0_28 = arith.constant 0 : index
    %c0_29 = arith.constant 0 : index
    %28 = vector.load %arg4[%c0_27, %c0_28, %c0_29] : memref<1x1x256xf32, #tpu.memory_space<vmem>>, vector<1x1x256xf32>
    %c0_30 = arith.constant 0 : index
    %c0_31 = arith.constant 0 : index
    %c0_32 = arith.constant 0 : index
    %29 = vector.load %arg5[%c0_30, %c0_31, %c0_32] : memref<1x1x256xf32, #tpu.memory_space<vmem>>, vector<1x1x256xf32>
    %30 = arith.subf %28, %29 : vector<1x1x256xf32>
    %c0_33 = arith.constant 0 : index
    %c0_34 = arith.constant 0 : index
    %c0_35 = arith.constant 0 : index
    %31 = vector.load %arg16[%c0_33, %c0_34, %c0_35] : memref<1x1x1xf32, #tpu.memory_space<vmem>>, vector<1x1x1xf32>
    %32 = arith.mulf %30, %30 : vector<1x1x256xf32>
    %33 = vector.shape_cast %32 : vector<1x1x256xf32> to vector<1x1x1x256xf32>
    %cst_36 = arith.constant dense<0.000000e+00> : vector<1xf32>
    %34 = vector.multi_reduction <add>, %33, %cst_36 [1, 2, 3] : vector<1x1x1x256xf32> to vector<1xf32>
    %35 = vector.shape_cast %34 : vector<1xf32> to vector<1x1x1x1xf32>
    %36 = vector.extract %35[0, 0, 0, 0] : f32 from vector<1x1x1x1xf32>
    %37 = vector.broadcast %36 : f32 to vector<1x1x1xf32>
    %38 = arith.addf %31, %37 : vector<1x1x1xf32>
    %c0_37 = arith.constant 0 : index
    %c0_38 = arith.constant 0 : index
    %c0_39 = arith.constant 0 : index
    %39 = vector.load %arg16[%c0_37, %c0_38, %c0_39] : memref<1x1x1xf32, #tpu.memory_space<vmem>>, vector<1x1x1xf32>
    tpu.vector_store %arg16[%c0_37, %c0_38, %c0_39], %38 {strides = array<i32>} : memref<1x1x1xf32, #tpu.memory_space<vmem>>, vector<1x1x1xf32>,
    %c0_40 = arith.constant 0 : index
    %c0_41 = arith.constant 0 : index
    %c0_42 = arith.constant 0 : index
    %40 = vector.load %arg8[%c0_40, %c0_41, %c0_42] : memref<1x4x256xf32, #tpu.memory_space<vmem>>, vector<1x4x256xf32>
    %c0_43 = arith.constant 0 : index
    %c0_44 = arith.constant 0 : index
    %c0_45 = arith.constant 0 : index
    %41 = vector.load %arg9[%c0_43, %c0_44, %c0_45] : memref<1x4x256xf32, #tpu.memory_space<vmem>>, vector<1x4x256xf32>
    %42 = arith.subf %40, %41 : vector<1x4x256xf32>
    %c0_46 = arith.constant 0 : index
    %c0_47 = arith.constant 0 : index
    %c0_48 = arith.constant 0 : index
    %43 = vector.load %arg17[%c0_46, %c0_47, %c0_48] : memref<1x1x1xf32, #tpu.memory_space<vmem>>, vector<1x1x1xf32>
    %44 = arith.mulf %42, %42 : vector<1x4x256xf32>
    %45 = vector.shape_cast %44 : vector<1x4x256xf32> to vector<1x1x4x256xf32>
    %cst_49 = arith.constant dense<0.000000e+00> : vector<1xf32>
    %46 = vector.multi_reduction <add>, %45, %cst_49 [1, 2, 3] : vector<1x1x4x256xf32> to vector<1xf32>
    %47 = vector.shape_cast %46 : vector<1xf32> to vector<1x1x1x1xf32>
    %48 = vector.extract %47[0, 0, 0, 0] : f32 from vector<1x1x1x1xf32>
    %49 = vector.broadcast %48 : f32 to vector<1x1x1xf32>
    %50 = arith.addf %43, %49 : vector<1x1x1xf32>
    %c0_50 = arith.constant 0 : index
    %c0_51 = arith.constant 0 : index
    %c0_52 = arith.constant 0 : index
    %51 = vector.load %arg17[%c0_50, %c0_51, %c0_52] : memref<1x1x1xf32, #tpu.memory_space<vmem>>, vector<1x1x1xf32>
    tpu.vector_store %arg17[%c0_50, %c0_51, %c0_52], %50 {strides = array<i32>} : memref<1x1x1xf32, #tpu.memory_space<vmem>>, vector<1x1x1xf32>,
    %c0_i32_53 = arith.constant 0 : i32
    %52 = arith.cmpi eq, %arg1, %c0_i32_53 : i32
    %53 = arith.extui %52 : i1 to i32
    %c0_i32_54 = arith.constant 0 : i32
    %54 = arith.cmpi ne, %53, %c0_i32_54 : i32
    scf.if %54 {
      %c0_55 = arith.constant 0 : index
      %c0_56 = arith.constant 0 : index
      %c0_57 = arith.constant 0 : index
      %55 = vector.load %arg14[%c0_55, %c0_56, %c0_57] : memref<1x1x1xf32, #tpu.memory_space<vmem>>, vector<1x1x1xf32>
      %c0_58 = arith.constant 0 : index
      %c0_59 = arith.constant 0 : index
      %c0_60 = arith.constant 0 : index
      %56 = vector.load %arg10[%c0_58, %c0_59, %c0_60] : memref<1x1x1xf32, #tpu.memory_space<vmem>>, vector<1x1x1xf32>
      tpu.vector_store %arg10[%c0_58, %c0_59, %c0_60], %55 {strides = array<i32>} : memref<1x1x1xf32, #tpu.memory_space<vmem>>, vector<1x1x1xf32>,
      %c0_61 = arith.constant 0 : index
      %c0_62 = arith.constant 0 : index
      %c0_63 = arith.constant 0 : index
      %57 = vector.load %arg15[%c0_61, %c0_62, %c0_63] : memref<1x4x1xf32, #tpu.memory_space<vmem>>, vector<1x4x1xf32>
      %c0_64 = arith.constant 0 : index
      %c0_65 = arith.constant 0 : index
      %c0_66 = arith.constant 0 : index
      %58 = vector.load %arg11[%c0_64, %c0_65, %c0_66] : memref<1x4x1xf32, #tpu.memory_space<vmem>>, vector<1x4x1xf32>
      tpu.vector_store %arg11[%c0_64, %c0_65, %c0_66], %57 {strides = array<i32>} : memref<1x4x1xf32, #tpu.memory_space<vmem>>, vector<1x4x1xf32>,
      %c0_67 = arith.constant 0 : index
      %c0_68 = arith.constant 0 : index
      %c0_69 = arith.constant 0 : index
      %59 = vector.load %arg16[%c0_67, %c0_68, %c0_69] : memref<1x1x1xf32, #tpu.memory_space<vmem>>, vector<1x1x1xf32>
      %c0_70 = arith.constant 0 : index
      %c0_71 = arith.constant 0 : index
      %c0_72 = arith.constant 0 : index
      %60 = vector.load %arg12[%c0_70, %c0_71, %c0_72] : memref<1x1x1xf32, #tpu.memory_space<vmem>>, vector<1x1x1xf32>
      tpu.vector_store %arg12[%c0_70, %c0_71, %c0_72], %59 {strides = array<i32>} : memref<1x1x1xf32, #tpu.memory_space<vmem>>, vector<1x1x1xf32>,
      %c0_73 = arith.constant 0 : index
      %c0_74 = arith.constant 0 : index
      %c0_75 = arith.constant 0 : index
      %61 = vector.load %arg17[%c0_73, %c0_74, %c0_75] : memref<1x1x1xf32, #tpu.memory_space<vmem>>, vector<1x1x1xf32>
      %c0_76 = arith.constant 0 : index
      %c0_77 = arith.constant 0 : index
      %c0_78 = arith.constant 0 : index
      %62 = vector.load %arg13[%c0_76, %c0_77, %c0_78] : memref<1x1x1xf32, #tpu.memory_space<vmem>>, vector<1x1x1xf32>
      tpu.vector_store %arg13[%c0_76, %c0_77, %c0_78], %61 {strides = array<i32>} : memref<1x1x1xf32, #tpu.memory_space<vmem>>, vector<1x1x1xf32>,
    } else {
    }
    return
  }
  func.func @transform_0(%arg0: i32, %arg1: i32) -> (i32, i32, i32) {
    %c0_i32 = arith.constant 0 : i32
    %c0_i32_0 = arith.constant 0 : i32
    return %arg0, %c0_i32, %arg1 : i32, i32, i32
  }
  func.func @transform_1(%arg0: i32, %arg1: i32) -> (i32, i32, i32) {
    %c0_i32 = arith.constant 0 : i32
    %c0_i32_0 = arith.constant 0 : i32
    return %arg0, %c0_i32, %arg1 : i32, i32, i32
  }
  func.func @transform_2(%arg0: i32, %arg1: i32) -> (i32, i32, i32) {
    %c0_i32 = arith.constant 0 : i32
    %c0_i32_0 = arith.constant 0 : i32
    return %arg0, %c0_i32, %arg1 : i32, i32, i32
  }
  func.func @transform_3(%arg0: i32, %arg1: i32) -> (i32, i32, i32) {
    %c0_i32 = arith.constant 0 : i32
    %c0_i32_0 = arith.constant 0 : i32
    return %arg0, %c0_i32, %arg1 : i32, i32, i32
  }
  func.func @transform_4(%arg0: i32, %arg1: i32) -> (i32, i32, i32) {
    %c0_i32 = arith.constant 0 : i32
    %c0_i32_0 = arith.constant 0 : i32
    return %arg0, %c0_i32, %arg1 : i32, i32, i32
  }
  func.func @transform_5(%arg0: i32, %arg1: i32) -> (i32, i32, i32) {
    %c0_i32 = arith.constant 0 : i32
    %c0_i32_0 = arith.constant 0 : i32
    return %arg0, %c0_i32, %arg1 : i32, i32, i32
  }
  func.func @transform_6(%arg0: i32, %arg1: i32) -> (i32, i32, i32) {
    %c0_i32 = arith.constant 0 : i32
    %c0_i32_0 = arith.constant 0 : i32
    return %arg0, %c0_i32, %arg1 : i32, i32, i32
  }
  func.func @transform_7(%arg0: i32, %arg1: i32) -> (i32, i32, i32) {
    %c0_i32 = arith.constant 0 : i32
    %c0_i32_0 = arith.constant 0 : i32
    return %arg0, %c0_i32, %arg1 : i32, i32, i32
  }
  func.func @transform_8(%arg0: i32, %arg1: i32) -> (i32, i32, i32) {
    %c0_i32 = arith.constant 0 : i32
    %c0_i32_0 = arith.constant 0 : i32
    %c0_i32_1 = arith.constant 0 : i32
    return %arg0, %c0_i32, %c0_i32_0 : i32, i32, i32
  }
  func.func @transform_9(%arg0: i32, %arg1: i32) -> (i32, i32, i32) {
    %c0_i32 = arith.constant 0 : i32
    %c0_i32_0 = arith.constant 0 : i32
    %c0_i32_1 = arith.constant 0 : i32
    return %arg0, %c0_i32, %c0_i32_0 : i32, i32, i32
  }
  func.func @transform_10(%arg0: i32, %arg1: i32) -> (i32, i32, i32) {
    %c0_i32 = arith.constant 0 : i32
    %c0_i32_0 = arith.constant 0 : i32
    %c0_i32_1 = arith.constant 0 : i32
    return %arg0, %c0_i32, %c0_i32_0 : i32, i32, i32
  }
  func.func @transform_11(%arg0: i32, %arg1: i32) -> (i32, i32, i32) {
    %c0_i32 = arith.constant 0 : i32
    %c0_i32_0 = arith.constant 0 : i32
    %c0_i32_1 = arith.constant 0 : i32
    return %arg0, %c0_i32, %c0_i32_0 : i32, i32, i32
  }
}

</mosaic_0001>

<bundles_post_ra>
// kernel: tpu_custom_call.1
= control target key start
LH: loop header
LB: loop body
LE: loop exit
PB: predicated region body
PF: predicated region fallthrough
CT: control target
= control target key end

     0   :  { %s1902_s0 = inlined_call_operand.hbm [shape: f32[2,1,256], index: 0, kind: input, shape index: {}]   ;;  %s1903_s1 = inlined_call_operand.hbm [shape: f32[2,1,256], index: 1, kind: input, shape index: {}]   ;;  %s1904_s2 = inlined_call_operand.hbm [shape: f32[2,1,256], index: 2, kind: input, shape index: {}]   ;;  %s1905_s3 = inlined_call_operand.vmem [shape: f32[2,1,256], index: 3, kind: input, shape index: {}]   ;;  %s1906_s4 = inlined_call_operand.hbm [shape: f32[2,4,256], index: 4, kind: input, shape index: {}]   ;;  %s1907_s5 = inlined_call_operand.hbm [shape: f32[2,4,256], index: 5, kind: input, shape index: {}]   ;;  %s1908_s6 = inlined_call_operand.hbm [shape: f32[2,4,256], index: 6, kind: input, shape index: {}]   ;;  %s1909_s7 = inlined_call_operand.hbm [shape: f32[2,4,256], index: 7, kind: input, shape index: {}]   ;;  %s1910_s8 = inlined_call_operand.vmem [shape: f32[2,1,1], index: 8, kind: output, shape index: {0}]   ;;  %s1911_s9 = inlined_call_operand.vmem [shape: f32[2,4,1], index: 9, kind: output, shape index: {1}]   ;;  %s1912_s10 = inlined_call_operand.vmem [shape: f32[2,1,1], index: 10, kind: output, shape index: {2}]   ;;  %s1913_s11 = inlined_call_operand.vmem [shape: f32[2,1,1], index: 11, kind: output, shape index: {3}]  }
   0x1   :  { %1920 = sst [smem:[#allocation25_spill]] %s1903_s1 }
   0x2   :  { %1921 = sst [smem:[#allocation26_spill]] %s1905_s3 }
   0x3   :  { %1922 = sst [smem:[#allocation27_spill]] %s1906_s4 }
   0x4   :  { %1923 = sst [smem:[#allocation28_spill]] %s1910_s8 }
   0x5   :  { %1924 = sst [smem:[#allocation29_spill]] %s1911_s9 }
   0x6   :  { %1925 = sst [smem:[#allocation30_spill]] %s1912_s10 }
   0x7   :  { %1926 = sst [smem:[#allocation31_spill]] %s1913_s11 }
   0x8   :  { %17 = vsyncpa [#allocation7], 0 }
   0x9   :  { %19 = vsyncpa [#allocation7 + $0x1], 0 }
   0xa   :  { %20 = vsyncpa [#allocation9], 0 }
   0xb   :  { %22 = vsyncpa [#allocation9 + $0x1], 0 }
   0xc   :  { %23 = vsyncpa [#allocation12], 0 }
   0xd   :  { %25 = vsyncpa [#allocation12 + $0x1], 0 }
   0xe   :  { %26 = vsyncpa [#allocation15], 0 }
   0xf   :  { %28 = vsyncpa [#allocation15 + $0x1], 0  ;;  %s1649_s17 = smov 0   ;;  %s1651_s18 = smov 0  }
  0x10   :  { %s1653_s19 = smov 0   ;;  %s1655_s20 = smov 0  }
  0x11   :  { %s1657_s21 = smov 0   ;;  %s1659_s22 = smov 0  }
  0x12 LB: > { %1927 = sst [smem:[#allocation21_spill]] %s1567_s19  ;;  %s1914_s23 = sadd.s32 4294967295, %s1579_s22   ;;  %s1579_s22 = sphi %s1659_s22, %s34_s22   ;;  %s1575_s21 = sphi %s1657_s21, %s1948_s21   ;;  %s1571_s20 = sphi %s1655_s20, %s1947_s20   ;;  %s1567_s19 = sphi %s1653_s19, %s1946_s19   ;;  %s1563_s18 = sphi %s1651_s18, %s1950_s18   ;;  %s1559_s17 = sphi %s1649_s17, %s1949_s17  }
  0x13   : > { %1928 = sst [smem:[#allocation22_spill]] %s1575_s21  ;;  %s46_s24 = sadd.s32 1, %s1575_s21 }
  0x14   : > { %p48_p0 = scmp.ge.s32.totalorder %s46_s24, 2  ;;  %s55_s25 = sadd.s32 1, %s1567_s19 }
  0x15   : > { %p62_p1 = scmp.ne.s32.totalorder %s1567_s19, %s1563_s18  ;;  %p63_p2 = scmp.eq.s32.totalorder %s1579_s22, 0 }
  0x16   : > { %s1952_s24 = smov (%p48_p0, %s46_s24), 0  ;;  %p68_p4 = scmp.ne.s32.totalorder %s1563_s18, %s1559_s17 }
  0x17   : > { %1929 = sst [smem:[#allocation23_spill]] %s1952_s24  ;;  %p64_p3 = por %p63_p2, %p62_p1 }
  0x18   : > { %s50_s26 = ssub.s32 %s1575_s21, %s1952_s24  ;;  %p69_p5 = scmp.eq.s32.totalorder %s1914_s23, 0 }
  0x19   : > { %p53_p6 = scmp.eq.s32.totalorder %s50_s26, 0  ;;  %p1270_p8 = scmp.lt.s32.totalorder %s1579_s22, 2 }
  0x1a   : > { %p1690_p7 = por %p69_p5, %p68_p4  ;;  %s1699_s29 = sand.u32 1, %s1567_s19  }
  0x1b   : > { %s1696_s28 = scalar_select %p53_p6, %s1567_s19, %s55_s25  }
  0x1c   : > { %s1702_s30 = sshll.u32 %s1575_s21, 5  ;;  %s1705_s12 = sshll.u32 %s1699_s29, 1 }
  0x1d   : > { %1931 = sst [smem:[#allocation24_spill]] %s1696_s28  ;;  %p1707_p9 = pnand %p1270_p8, %p64_p3 }
  0x1e   : > { %s1712_s14 = sand.u32 1, %s1579_s22   ;;  %s1933_s1 = sld [smem:[#allocation25_spill]] }
  0x1f   : > { %s417_s25 = scalar_lea.vmem [#allocation8], %s1705_s12  ;;  %p1209_p10 = scmp.ge.s32.totalorder %s1579_s22, 1 }
  0x20   : > { %s427_s26 = sshll.u32 %s417_s25, 4  ;;  %s1917_s23 = scalar_lea.sflag [#allocation9], %s1712_s14  ;;  %s428_s26 = int_to_ptr.vmem [resolvable:$true] %s427_s26 }
  0x21   : > { %p1723_p11 = pneg %p1707_p9  ;;  %s1334_s28 = scalar_lea.vmem %s428_s26, 32 }
  0x22   : > { %p1335_p12 = scmp.ne.s32.totalorder %s428_s26, %s1334_s28  ;;  %s1581_s19 = smov [#allocation8]  }
  0x23   : > { %s1339_s15 = sshll.u32 %s1581_s19, 4  ;;  %s1340_s15 = int_to_ptr.vmem [resolvable:$false] %s1339_s15 }
  0x24   : > { %s425_s17 = scalar_lea.hbm %s1933_s1, %s1702_s30  ;;  %p1337_p13 = pnand %p1335_p12, %p1723_p11 }
  0x25   : > { %s1341_s16 = scalar_lea.vmem %s1340_s15, 64  ;;  %p1342_p1 = scmp.lt.s32.totalorder %s428_s26, %s1340_s15 }
  0x26   : > { %p1338_p0 = pneg %p1337_p13  ;;  %p1343_p2 = scmp.lt.s32.totalorder %s1341_s16, %s1334_s28 }
  0x28   : > { %p1344_p3 = por %p1343_p2, %p1342_p1 }
  0x2a   : > { %p1345_p4 = pnand %p1344_p3, %p1338_p0 }
  0x2c   : > { %1348 = shalt.err (!%p1345_p4)
}
  0x2d   : > { %1254 = dma.hbm_to_vmem [thread:$0]  (!%p1707_p9), %s425_s17, 32, %s428_s26, %s1917_s23  }
  0x2e   : > { %p549_p5 = scmp.lt.s32.totalorder %s1579_s22, 3  ;;  %s1735_s19 = sshll.u32 %s1699_s29, 3 }
  0x2f   : > { %s1738_s25 = sshll.u32 %s1575_s21, 7  ;;  %s1936_s4 = sld [smem:[#allocation27_spill]] }
  0x30   : > { %p1742_p6 = pnand %p1209_p10, %p549_p5  ;;  %s471_s11 = scalar_lea.vmem [#allocation11], %s1735_s19 }
  0x31   : > { %s481_s10 = sshll.u32 %s471_s11, 4  ;;  %s1919_s17 = scalar_lea.sflag [#allocation12], %s1712_s14  ;;  %s482_s10 = int_to_ptr.vmem [resolvable:$true] %s481_s10 }
  0x32   : > { %s1362_s26 = scalar_lea.vmem %s482_s10, 128  ;;  %s1582_s23 = smov [#allocation11]  }
  0x33   : > { %p1363_p8 = scmp.ne.s32.totalorder %s482_s10, %s1362_s26  ;;  %s1367_s21 = sshll.u32 %s1582_s23, 4  ;;  %s1368_s21 = int_to_ptr.vmem [resolvable:$false] %s1367_s21 }
  0x34   : > { %s1369_s8 = scalar_lea.vmem %s1368_s21, 256  ;;  %p1370_p10 = scmp.lt.s32.totalorder %s482_s10, %s1368_s21 }
  0x35   : > { %s479_s1 = scalar_lea.hbm %s1936_s4, %s1738_s25  ;;  %p1365_p12 = pnand %p1363_p8, %p1723_p11 }
  0x36   : > { %p1371_p0 = scmp.lt.s32.totalorder %s1369_s8, %s1362_s26 }
  0x37   : > { %p1366_p13 = pneg %p1365_p12 }
  0x38   : > { %p1372_p1 = por %p1371_p0, %p1370_p10 }
  0x3a   : > { %p1373_p2 = pnand %p1372_p1, %p1366_p13 }
  0x3c   : > { %1376 = shalt.err (!%p1373_p2)
}
  0x3d   : > { %1260 = dma.hbm_to_vmem [thread:$0]  (!%p1707_p9), %s479_s1, 128, %s482_s10, %s1919_s17  }
  0x3e   : > { %s521_s23 = scalar_lea.hbm %s1908_s6, %s1738_s25  ;;  %s513_s16 = scalar_lea.vmem [#allocation14], %s1735_s19 }
  0x3f   : > { %s523_s4 = sshll.u32 %s513_s16, 4  ;;  %s510_s8 = scalar_lea.sflag [#allocation15], %s1712_s14  ;;  %s524_s4 = int_to_ptr.vmem [resolvable:$true] %s523_s4 }
  0x40   : > { %s1390_s21 = scalar_lea.vmem %s524_s4, 128  ;;  %s1583_s26 = smov [#allocation14]  }
  0x41   : > { %p1391_p3 = scmp.ne.s32.totalorder %s524_s4, %s1390_s21  ;;  %s1395_s9 = sshll.u32 %s1583_s26, 4  ;;  %s1396_s9 = int_to_ptr.vmem [resolvable:$false] %s1395_s9 }
  0x42   : > { %s1397_s3 = scalar_lea.vmem %s1396_s9, 256  ;;  %p1398_p8 = scmp.lt.s32.totalorder %s524_s4, %s1396_s9 }
  0x43   : > { %p1393_p4 = pnand %p1391_p3, %p1723_p11  ;;  %p1399_p12 = scmp.lt.s32.totalorder %s1397_s3, %s1390_s21 }
  0x45   : > { %p1394_p5 = pneg %p1393_p4  ;;  %p1400_p13 = por %p1399_p12, %p1398_p8 }
  0x47   : > { %p1401_p10 = pnand %p1400_p13, %p1394_p5 }
  0x49   : > { %1404 = shalt.err (!%p1401_p10)
}
  0x4a   : > { %1266 = dma.hbm_to_vmem [thread:$0]  (!%p1707_p9), %s521_s23, 128, %s524_s4, %s510_s8  }
  0x4b   : > { %s404_s11 = scalar_lea.hbm %s1902_s0, %s1702_s30  ;;  %s396_s15 = scalar_lea.vmem [#allocation6], %s1705_s12 }
  0x4c   : > { %s406_s16 = sshll.u32 %s396_s15, 4  ;;  %s393_s3 = scalar_lea.sflag [#allocation7], %s1699_s29  ;;  %s407_s16 = int_to_ptr.vmem [resolvable:$true] %s406_s16 }
  0x4d   : > { %s1418_s9 = scalar_lea.vmem %s407_s16, 32  ;;  %s1584_s21 = smov [#allocation6]  }
  0x4e   : > { %p1419_p0 = scmp.ne.s32.totalorder %s407_s16, %s1418_s9  ;;  %s1423_s26 = sshll.u32 %s1584_s21, 4  ;;  %s1424_s26 = int_to_ptr.vmem [resolvable:$false] %s1423_s26 }
  0x4f   : > { %s1425_s17 = scalar_lea.vmem %s1424_s26, 64  ;;  %p1426_p3 = scmp.lt.s32.totalorder %s407_s16, %s1424_s26 }
  0x50   : > { %p1421_p1 = pnand %p1419_p0, %p1723_p11  ;;  %p1427_p4 = scmp.lt.s32.totalorder %s1425_s17, %s1418_s9 }
  0x52   : > { %p1422_p2 = pneg %p1421_p1  ;;  %p1428_p5 = por %p1427_p4, %p1426_p3 }
  0x54   : > { %p1429_p8 = pnand %p1428_p5, %p1422_p2 }
  0x56   : > { %1432 = shalt.err (!%p1429_p8)
}
  0x57   : > { %1251 = dma.hbm_to_vmem [thread:$0]  (!%p1707_p9), %s404_s11, 32, %s407_s16, %s393_s3  }
  0x58   : > { %s446_s23 = scalar_lea.hbm %s1904_s2, %s1702_s30  ;;  %s438_s1 = scalar_lea.vmem [#allocation10], %s1705_s12 }
  0x59   : > { %s448_s10 = sshll.u32 %s438_s1, 4  ;;  %s1585_s17 = smov [#allocation10]   ;;  %s449_s10 = int_to_ptr.vmem [resolvable:$true] %s448_s10 }
  0x5a   : > { %s1446_s15 = scalar_lea.vmem %s449_s10, 32  ;;  %s1451_s9 = sshll.u32 %s1585_s17, 4  ;;  %s1452_s9 = int_to_ptr.vmem [resolvable:$false] %s1451_s9 }
  0x5b   : > { %p1447_p12 = scmp.ne.s32.totalorder %s449_s10, %s1446_s15  ;;  %s1453_s21 = scalar_lea.vmem %s1452_s9, 64 }
  0x5c   : > { %p1454_p0 = scmp.lt.s32.totalorder %s449_s10, %s1452_s9  ;;  %p1455_p1 = scmp.lt.s32.totalorder %s1453_s21, %s1446_s15 }
  0x5d   : > { %p1449_p13 = pnand %p1447_p12, %p1723_p11 }
  0x5e   : > { %p1456_p2 = por %p1455_p1, %p1454_p0 }
  0x5f   : > { %p1450_p10 = pneg %p1449_p13 }
  0x61   : > { %p1457_p3 = pnand %p1456_p2, %p1450_p10 }
  0x63   : > { %1460 = shalt.err (!%p1457_p3)
}
  0x64   : > { %s1937_s30 = scalar_lea.sflag [#allocation9], %s1712_s14  ;;  %s500_s16 = scalar_lea.hbm %s1907_s5, %s1738_s25 }
  0x65   : > { %1257 = dma.hbm_to_vmem [thread:$0]  (!%p1707_p9), %s446_s23, 32, %s449_s10, %s1937_s30  }
  0x66   : > { %s492_s3 = scalar_lea.vmem [#allocation13], %s1735_s19  ;;  %s1586_s29 = smov [#allocation13]  }
  0x67   : > { %s502_s26 = sshll.u32 %s492_s3, 4  ;;  %s1479_s1 = sshll.u32 %s1586_s29, 4  ;;  %s503_s26 = int_to_ptr.vmem [resolvable:$true] %s502_s26  ;;  %s1480_s1 = int_to_ptr.vmem [resolvable:$false] %s1479_s1 }
  0x68   : > { %s1474_s4 = scalar_lea.vmem %s503_s26, 128  ;;  %s1481_s15 = scalar_lea.vmem %s1480_s1, 256 }
  0x69   : > { %p1475_p4 = scmp.ne.s32.totalorder %s503_s26, %s1474_s4  ;;  %p1482_p12 = scmp.lt.s32.totalorder %s503_s26, %s1480_s1 }
  0x6a   : > { %p1483_p13 = scmp.lt.s32.totalorder %s1481_s15, %s1474_s4 }
  0x6b   : > { %p1477_p5 = pnand %p1475_p4, %p1723_p11 }
  0x6c   : > { %p1484_p10 = por %p1483_p13, %p1482_p12 }
  0x6d   : > { %p1478_p8 = pneg %p1477_p5 }
  0x6f   : > { %p1485_p0 = pnand %p1484_p10, %p1478_p8 }
  0x71   : > { %1488 = shalt.err (!%p1485_p0)
}
  0x72   : > { %s1938_s23 = scalar_lea.sflag [#allocation12], %s1712_s14  ;;  %s542_s9 = scalar_lea.hbm %s1909_s7, %s1738_s25 }
  0x73   : > { %1263 = dma.hbm_to_vmem [thread:$0]  (!%p1707_p9), %s500_s16, 128, %s503_s26, %s1938_s23  }
  0x74   : > { %s534_s21 = scalar_lea.vmem [#allocation16], %s1735_s19  ;;  %s1587_s11 = smov [#allocation16]  }
  0x75   : > { %s544_s30 = sshll.u32 %s534_s21, 4  ;;  %s1507_s3 = sshll.u32 %s1587_s11, 4  ;;  %s545_s30 = int_to_ptr.vmem [resolvable:$true] %s544_s30  ;;  %s1508_s3 = int_to_ptr.vmem [resolvable:$false] %s1507_s3 }
  0x76   : > { %s1502_s12 = scalar_lea.vmem %s545_s30, 128  ;;  %s1509_s4 = scalar_lea.vmem %s1508_s3, 256 }
  0x77   : > { %p1503_p1 = scmp.ne.s32.totalorder %s545_s30, %s1502_s12  ;;  %p1510_p4 = scmp.lt.s32.totalorder %s545_s30, %s1508_s3 }
  0x78   : > { %p1511_p5 = scmp.lt.s32.totalorder %s1509_s4, %s1502_s12 }
  0x79   : > { %p1505_p2 = pnand %p1503_p1, %p1723_p11 }
  0x7a   : > { %p1512_p8 = por %p1511_p5, %p1510_p4 }
  0x7b   : > { %p1506_p3 = pneg %p1505_p2 }
  0x7d   : > { %p1513_p12 = pnand %p1512_p8, %p1506_p3 }
  0x7f   : > { %1516 = shalt.err (!%p1513_p12)
}
  0x80   : > { %1269 = dma.hbm_to_vmem [thread:$0]  (!%p1707_p9), %s542_s9, 128, %s545_s30, %s510_s8  }
  0x81   : > { %553 = sbr.rel (%p1742_p6) target bundleno = 388 (0x184), region = 52  ;;  %s555_s24 = sand.u32 (!%p1742_p6), 1, %s1563_s18  }
  0x82   : > { %s1816_s19 = sshll.u32 (!%p1742_p6), %s555_s24, 1  ;;  %s556_s25 = scalar_lea.sflag (!%p1742_p6), [#allocation7], %s555_s24 }
  0x83   : > { %s559_s16 = scalar_lea.vmem (!%p1742_p6), [#allocation6], %s1816_s19 }
  0x86   : > { %1542 = dma.done.wait (%p1690_p7), %s556_s25, 32  }
  0x87   : > { %1544 = vsyncadd (%p1690_p7), %s556_s25, 4294967264  ;;  %s1939_s13 = sadd.s32 4294967295, %s1579_s22   ;;  %s568_s8 = scalar_lea.vmem [#allocation8], %s1816_s19 }
  0x88   : > { %s564_s14 = sand.u32 1, %s1939_s13  }
  0x89   : > { %s565_s28 = scalar_lea.sflag [#allocation9], %s564_s14 }
  0x8a   : > { %1546 = dma.done.wait (%p1690_p7), %s565_s28, 64  }
  0x8b   : > { %1548 = vsyncadd (%p1690_p7), %s565_s28, 4294967232  ;;  %s1213_s26 = sshll.u32 %s555_s24, 3  ;;  %s577_s29 = scalar_lea.vmem [#allocation10], %s1816_s19 }
  0x8c   : > { %s583_s1 = scalar_lea.sflag [#allocation12], %s564_s14  ;;  %s586_s15 = scalar_lea.vmem [#allocation11], %s1213_s26 }
  0x8d   : > { %1550 = dma.done.wait (%p1690_p7), %s583_s1, 256  }
  0x8e   : > { %1552 = vsyncadd (%p1690_p7), %s583_s1, 4294967040  ;;  %s595_s23 = scalar_lea.vmem [#allocation13], %s1213_s26  ;;  %s601_s10 = scalar_lea.sflag [#allocation15], %s564_s14 }
  0x8f   : > { %s604_s17 = scalar_lea.vmem [#allocation14], %s1213_s26 }
  0x90   : > { %1554 = dma.done.wait (%p1690_p7), %s601_s10, 256  }
  0x91   : > { %1556 = vsyncadd (%p1690_p7), %s601_s10, 4294967040  ;;  %p702_p9 = scmp.lt.s32.totalorder %s1571_s20, 1  ;;  %v837_v0 = vld [vmem:[%s604_s17] sm:$0xff]  ;;  %s613_s9 = scalar_lea.vmem [#allocation16], %s1213_s26  ;;  %v738_v4 = vld [vmem:[%s595_s23] sm:$0xff]  ;;  %v765_v6 = vlaneseq  ;;  %vm744_vm0 = vcmask 1043456  }
  0x92   : > { %v838_v1 = vld [vmem:[%s613_s9] sm:$0xff]  ;;  %v737_v2 = vld [vmem:[%s586_s15] sm:$0xff]  ;;  %s1940_s12 = sld [smem:[#allocation26_spill]]  ;;  %vm777_vm1 = vcmask 1040384   ;;  %vm731_vm2 = vcmask 0   ;;  %v1588_v55 = vmov 0.0  }
  0x93   : > { %s1954_s20 = smov (!%p702_p9, %s1571_s20), 1  ;;  %v839_v3 = vsub.f32 %v837_v0, %v838_v1  ;;  %v739_v5 = vsub.f32 %v737_v2, %v738_v4  ;;  %v796_v8 = vcombine.high %v737_v2, %v737_v2  ;;  %v759_v10 = vld [vmem:[%s559_s16] sm:$0x3]  ;;  %v760_v11 = vld [vmem:[%s568_s8] sm:$0x3]  ;;  %v766_v16 = vshrl.u32 %v765_v6, 7 }
  0x94   : > { %s1217_s21 = sshll.u32 %s1954_s20, 1  ;;  %v798_v17 = vsel %vm744_vm0, %v737_v2, 0.0  ;;  %v761_v20 = vadd.f32 %v760_v11, %v759_v10  ;;  %v806_v24 = vld [vmem:[%s577_s29] sm:$0x3]  ;;  %732 = vst.msk [vmem:[#allocation2] sm:$0x1] %vm731_vm2, %v1588_v55 }
  0x95   : > { %v841_v7 = vmul.f32 %v839_v3, %v839_v3  ;;  %v740_v9 = vmul.f32 %v739_v5, %v739_v5  ;;  %v799_v21 = vsel %vm744_vm0, %v796_v8, 0.0  ;;  %v767_v28 = vsub.s32 0, %v766_v16  ;;  %735 = vst.msk [vmem:[#allocation4] sm:$0x1] %vm731_vm2, %v1588_v55  ;;  %736 = vst.msk [vmem:[#allocation5] sm:$0x1] %vm731_vm2, %v1588_v55 }
  0x96   : > { %v800_v29 = vadd.f32 %v799_v21, %v798_v17  ;;  %v762_v32 = vmul.f32 0.5, %v761_v20  ;;  %v771_v36 = vsub.s32 1, %v766_v16  ;;  %vm733_vm3 = vcmask 3072   ;;  %s1218_s3 = sshll.u32 %s1954_s20, 2  ;;  %s1941_s19 = sld [smem:[#allocation29_spill]] }
  0x97   : > { %v843_v12 = vcombine.high %v841_v7, %v841_v7  ;;  %v845_v13 = vsel %vm744_vm0, %v841_v7, 0.0  ;;  %v742_v14 = vcombine.high %v740_v9, %v740_v9  ;;  %v745_v15 = vsel %vm744_vm0, %v740_v9, 0.0  ;;  %734 = vst.msk [vmem:[#allocation3] sm:$0xf] %vm733_vm3, %v1588_v55  ;;  %s1942_s26 = sld [smem:[#allocation28_spill]] }
  0x98   : > { %s708_s11 = scalar_lea.vmem %s1940_s12, %s1217_s21  ;;  %v746_v19 = vrot.slane %v745_v15, 4  ;;  %v768_v39 = vrot.slane %v762_v32, %v767_v28  ;;  %v772_v43 = vrot.slane %v762_v32, %v771_v36  ;;  %s1943_s23 = sld [smem:[#allocation30_spill]] }
  0x99   : > { %v846_v18 = vsel %vm744_vm0, %v843_v12, 0.0  ;;  %v752_v23 = vsel %vm744_vm0, %v742_v14, 0.0  ;;  %v807_v25 = vld [vmem:[%s708_s11] sm:$0x3]  ;;  %s1944_s21 = sld [smem:[#allocation31_spill]] }
  0x9a   : > { %v847_v22 = vadd.f32 %v846_v18, %v845_v13  ;;  %v747_v26 = vadd.f32 %v746_v19, %v745_v15  ;;  %v753_v27 = vrot.slane %v752_v23, 4  ;;  %v808_v33 = vsub.f32 %v806_v24, %v807_v25 }
  0x9b   : > { %v763_v17 = vld [vmem:[#allocation2] sm:$0x1] }
  0x9c   : > { %848 = vadd.xlane.f32.xlu1 %v847_v22  ;;  %v748_v30 = vrot.slane %v747_v26, 2  ;;  %v754_v31 = vadd.f32 %v753_v27, %v752_v23  ;;  %v810_v40 = vmul.f32 %v808_v33, %v808_v33  ;;  %s720_s25 = scalar_lea.vmem %s1941_s19, %s1218_s3  ;;  %v809_v20 = vld [vmem:[#allocation4] sm:$0x1]  ;;  %v840_v21 = vld [vmem:[#allocation5] sm:$0x1] }
  0x9d   : > { %s716_s29 = scalar_lea.vmem %s1942_s26, %s1954_s20 }
  0x9e   : > { %v749_v34 = vadd.f32 %v748_v30, %v747_v26  ;;  %v755_v35 = vrot.slane %v754_v31, 2  ;;  %v815_v46 = vrot.slane %v810_v40, %v767_v28  ;;  %v819_v47 = vrot.slane %v810_v40, %v771_v36  ;;  %v794_v57 = vld [vmem:[#allocation3] sm:$0xf]  ;;  %s723_s10 = scalar_lea.vmem %s1943_s23, %s1954_s20 }
  0x9f   : > { %s726_s27 = scalar_lea.vmem %s1944_s21, %s1954_s20 }
  0xa0   : > { %801 = vadd.xlane.f32.xlu1 %v800_v29  ;;  %v750_v37 = vrot.slane %v749_v34, 1  ;;  %v756_v38 = vadd.f32 %v755_v35, %v754_v31  ;;  %v822_v51 = vsel %vm777_vm1, %v815_v46, 0.0  ;;  %v823_v52 = vsel %vm777_vm1, %v819_v47, 0.0 }
  0xa1   : > { %v824_v54 = vadd.f32 %v823_v52, %v822_v51 }
  0xa2   : > { %v751_v41 = vadd.f32 %v750_v37, %v749_v34  ;;  %v757_v42 = vrot.slane %v756_v38, 1 }
  0xa4   : > { %v758_v44 = vadd.f32 %v757_v42, %v756_v38  ;;  %v775_v45 = vmul.f32 %v768_v39, %v751_v41 }
  0xa6   : > { %v776_v48 = vmul.f32 %v772_v43, %v758_v44  ;;  %v778_v49 = vsel %vm777_vm1, %v775_v45, 0.0 }
  0xa8   : > { %v779_v50 = vsel %vm777_vm1, %v776_v48, 0.0 }
  0xa9   : > { %v780_v53 = vadd.f32 %v779_v50, %v778_v49 }
  0xab   : > { %781 = vadd.xlane.f32.xlu0 %v780_v53 }
  0xaf   : > { %825 = vadd.xlane.f32.xlu0 %v824_v54 }
 0x125   : > { %v849_v56 = vpop.xlane.xlu1 %848 }
 0x126   : > { %v850_v60 = vrot.slane %v849_v56, 4 }
 0x128   : > { %v851_v62 = vadd.f32 %v850_v60, %v849_v56 }
 0x129   : > { %v802_v58 = vpop.xlane.xlu1 %801 }
 0x12a   : > { %v803_v59 = vadd.f32 %v802_v58, %v794_v57  ;;  %v852_v2 = vrot.slane %v851_v62, 2 }
 0x12c   : > { %805 = vst.msk [vmem:[#allocation3] sm:$0xf] %vm733_vm3, %v803_v59  ;;  %v853_v8 = vadd.f32 %v852_v2, %v851_v62 }
 0x12e   : > { %v854_v13 = vrot.slane %v853_v8, 1 }
 0x130   : > { %v855_v16 = vadd.f32 %v854_v13, %v853_v8 }
 0x133   : > { %v865_v61 = vld [vmem:[#allocation3] sm:$0xf] }
 0x134   : > { %866 = vst.msk [vmem:[%s720_s25] sm:$0xf] %vm733_vm3, %v865_v61  ;;  %v782_v63 = vpop.xlane.xlu0 %781 }
 0x135   : > { %v783_v0 = vrot.slane %v782_v63, 4 }
 0x137   : > { %v784_v1 = vadd.f32 %v783_v0, %v782_v63 }
 0x138   : > { %v826_v3 = vpop.xlane.xlu0 %825 }
 0x139   : > { %v785_v4 = vrot.slane %v784_v1, 2  ;;  %v827_v5 = vrot.slane %v826_v3, 4 }
 0x13b   : > { %v828_v6 = vadd.f32 %v827_v5, %v826_v3  ;;  %v786_v7 = vadd.f32 %v785_v4, %v784_v1 }
 0x13d   : > { %v829_v9 = vrot.slane %v828_v6, 2  ;;  %v787_v10 = vrot.slane %v786_v7, 1 }
 0x13f   : > { %v830_v11 = vadd.f32 %v829_v9, %v828_v6  ;;  %v788_v12 = vadd.f32 %v787_v10, %v786_v7 }
 0x141   : > { %1228 = vpush %v788_v12  ;;  %v831_v14 = vrot.slane %v830_v11, 1 }
 0x143   : > { %v832_v15 = vadd.f32 %v831_v14, %v830_v11 }
 0x145   : > { %1230 = vpush %v832_v15 }
 0x146   : > { %1232 = vpush %v855_v16 }
 0x172   : > { %s1229_s16 = spop %1228 }
 0x173   : > { %v790_v18 = vstv %s1229_s16 }
 0x174   : > { %v791_v19 = vadd.f32 %v790_v18, %v763_v17 }
 0x176   : > { %793 = vst.msk [vmem:[#allocation2] sm:$0x1] %vm731_vm2, %v791_v19  ;;  %s1231_s13 = spop %1230 }
 0x177   : > { %v834_v22 = vstv %s1231_s13  ;;  %s1233_s14 = spop %1232 }
 0x178   : > { %v835_v23 = vadd.f32 %v834_v22, %v809_v20  ;;  %v857_v24 = vstv %s1233_s14 }
 0x179   : > { %v858_v25 = vadd.f32 %v857_v24, %v840_v21 }
 0x17a   : > { %836 = vst.msk [vmem:[#allocation4] sm:$0x1] %vm731_vm2, %v835_v23 }
 0x17b   : > { %859 = vst.msk [vmem:[#allocation5] sm:$0x1] %vm731_vm2, %v858_v25 }
 0x17d   : > { %v863_v26 = vld [vmem:[#allocation2] sm:$0x1] }
 0x17e   : > { %864 = vst.msk [vmem:[%s716_s29] sm:$0x1] %vm731_vm2, %v863_v26 }
 0x181   : > { %v867_v27 = vld [vmem:[#allocation4] sm:$0x1] }
 0x182   : > { %868 = vst.msk [vmem:[%s723_s10] sm:$0x1] %vm731_vm2, %v867_v27  ;;  %v869_v28 = vld [vmem:[#allocation5] sm:$0x1] }
 0x183   : > { %870 = vst.msk [vmem:[%s726_s27] sm:$0x1] %vm731_vm2, %v869_v28 }
 0x184 PF: > { %s34_s22 = sadd.s32 1, %s1579_s22   ;;  %s1945_s30 = sld [smem:[#allocation21_spill]] }
 0x185   : > { %p31_p7 = scmp.ge.s32.totalorder %s34_s22, 4   ;;  %s1946_s19 = sld [smem:[#allocation24_spill]] }
 0x186   : > { %s1947_s20 = sld [smem:[#allocation22_spill]]  ;;  %s1949_s17 = smov %s1563_s18 }
 0x187   : > { %s1948_s21 = sld [smem:[#allocation23_spill]]  ;;  %33 = sbr.rel (!%p31_p7) target bundleno = 18 (0x12), region = 211 }
 0x18a   : > { %s1950_s18 = smov %s1945_s30 }
 0x18c   :  { %926 = vsyncpa [#allocation7], 1 }
 0x18d   :  { %928 = vsyncpa [#allocation7 + $0x1], 1 }
 0x18e   :  { %929 = vsyncpa [#allocation9], 1 }
 0x18f   :  { %931 = vsyncpa [#allocation9 + $0x1], 1 }
 0x190   :  { %932 = vsyncpa [#allocation12], 1 }
 0x191   :  { %934 = vsyncpa [#allocation12 + $0x1], 1 }
 0x192   :  { %935 = vsyncpa [#allocation15], 1 }
 0x193   :  { %937 = vsyncpa [#allocation15 + $0x1], 1 }

</bundles_post_ra>
